<compile_context>
chip_gen: v6e
topology: v6e:2x2x1
jax: 0.10.0
libtpu: 0.0.40
codegen_flags: <defaults>
</compile_context>

<pallas_src>
import functools
from typing import NamedTuple, Optional

import jax
import jax.numpy as jnp
from jax.experimental import pallas as pl
from jax.experimental.pallas import tpu as pltpu


# ----------------------------------------------------------------------------- helpers
def _cdiv(a, b):
    return -(-a // b)


def _round_up(x, m):
    return _cdiv(x, m) * m


_TILE_VMEM_BUDGET = 24 << 20  # keep streamed tiles well under v7x's 64 MiB VMEM


def _rows_for_vmem(x_cols, x_dtype, out_cols, out_dtype):
    """Max rows per tile so (triple-buffered x + double-buffered out) fits the budget,
    accounting for (.,128) lane padding."""
    per_row = (_round_up(x_cols, 128) * jnp.dtype(x_dtype).itemsize * 3
               + _round_up(out_cols, 128) * jnp.dtype(out_dtype).itemsize * 2)
    return max(8, (_TILE_VMEM_BUDGET // per_row) // 8 * 8)


def _pick_row_tile(n_rows, row_tile, sublane):
    """Rows per grid step: a multiple of the sublane pack, >= 2 grid steps when the row
    count allows (v7x megacore + double buffering), never larger than the array
    (a full-extent block is used for tiny inputs)."""
    if n_rows <= sublane:
        return max(n_rows, 1)
    n_blocks = max(2, _cdiv(n_rows, max(row_tile, 1)))
    tr = _round_up(_cdiv(n_rows, n_blocks), sublane)
    return min(tr, n_rows)


def _vmem_limit_bytes(tiles):
    """(sublane,lane)-padded VMEM accounting (lane -> 128, sublane -> 16 covers both the
    f32 (8,128) and bf16 (16,128) native tiles), times the buffer count, plus headroom."""
    need = 0
    for rows, cols, dtype, nbuf in tiles:
        need += _round_up(rows, 16) * _round_up(cols, 128) * jnp.dtype(dtype).itemsize * nbuf
    return int(min(max(need + (8 << 20), 32 << 20), 64 << 20))


def _stream_spec(block_shape, index_map, want_buffers):
    """Streamed-input BlockSpec; asks for a deeper pipeline when available."""
    if want_buffers > 2 and hasattr(pl, "Buffered"):
        try:
            spec = pl.BlockSpec(block_shape, index_map,
                                pipeline_mode=pl.Buffered(want_buffers))
            return spec, want_buffers
        except TypeError:  # older JAX without BlockSpec(pipeline_mode=...)
            pass
    return pl.BlockSpec(block_shape, index_map), 2


# ----------------------------------------------------------------------------- kernels
def _gate_rowwise_kernel(x_ref, w_ref, b_ref, o_ref, *, d_output):
    """Row-wise fallback: out = d_output * softmax(x @ (W^T/beta) + b/beta, axis=-1)."""
    logits = jnp.dot(x_ref[...], w_ref[...], preferred_element_type=jnp.float32)
    logits = logits + b_ref[...]                      # [1, d_output] broadcasts over rows
    m = jnp.max(logits, axis=-1, keepdims=True)
    e = jnp.exp(logits - m)
    s = jnp.sum(e, axis=-1, keepdims=True)
    o_ref[...] = (e * (d_output * pl.reciprocal(s, approx=False))).astype(o_ref.dtype)


def _gate_packed_kernel(x_ref, w_ref, b_ref, ones_ref, o_ref, *, d_output):
    """Lane-dense packed path: G rows folded per kernel row.

      x_ref    : [tr, G*d_input]            G original rows concatenated along lanes
      w_ref    : [G*d_input, G*d_output]    block-diagonal kron(I_G, W^T / beta)
      b_ref    : [1, G*d_output]            bias / beta tiled G times
      ones_ref : [G*d_output, G*d_output]   block-diagonal ones (group sum + broadcast)
      o_ref    : [tr, G*d_output]           128 lanes wide -> unmasked full-lane stores
    """
    logits = jnp.dot(x_ref[...], w_ref[...], preferred_element_type=jnp.float32)
    logits = logits + b_ref[...]
    # Stabilise with the packed-row max: it upper-bounds every group's max and softmax is
    # shift-invariant within a group, so the result is exact while keeping exp() <= 1.
    # TODO(synk): exact per-group max (pltpu.roll tree + broadcast) if packed groups could
    # ever span a logit range > ~80 (f32 exp underflow); unreachable for bounded logits.
    m = jnp.max(logits, axis=-1, keepdims=True)
    e = jnp.exp(logits - m)
    # Per-group denominators, broadcast back to every lane of their group, via one
    # block-diagonal-ones matmul (the MXU has huge slack in this HBM-bound op).
    denom = jnp.dot(e, ones_ref[...], preferred_element_type=jnp.float32)
    o_ref[...] = (e * (d_output * pl.reciprocal(denom, approx=False))).astype(o_ref.dtype)


# ----------------------------------------------------------------------------- params
class GateParams(NamedTuple):
    w_t: jax.Array                    # [d_input, d_output], 1/beta folded, compute dtype
    b2d: jax.Array                    # [1, d_output], f32
    group: int                        # rows folded per lane-dense output row (1 = off)
    w_pack: Optional[jax.Array]       # [group*d_input, group*d_output]
    b_pack: Optional[jax.Array]       # [1, group*d_output], f32
    seg_ones: Optional[jax.Array]     # [group*d_output, group*d_output], f32


def prepare_gate_params(weight, bias, *, beta=1.0, compute_dtype=jnp.float32, group=None):
    """One-time parameter prep (hoisted out of the per-call path).

    weight: [d_output, d_input] (torch nn.Linear convention), bias: [d_output].
    Folds 1/beta into W/b, transposes W, casts weights to the compute dtype, and builds
    the block-diagonal packed operands for the lane-dense kernel.
    """
    weight = jnp.asarray(weight, jnp.float32)
    bias = jnp.asarray(bias, jnp.float32)
    d_output, d_input = weight.shape
    inv_beta = 1.0 / float(beta)
    w_t = weight.T * inv_beta                               # [d_input, d_output], f32
    b2d = (bias * inv_beta).reshape(1, d_output)            # [1, d_output], f32

    if group is None:
        group = 128 // d_output if (0 < d_output <= 64 and 128 % d_output == 0) else 1
    group = max(1, int(group))

    if group > 1:
        eye = jnp.eye(group, dtype=jnp.float32)
        w_pack = jnp.kron(eye, w_t).astype(compute_dtype)   # [G*d_in, G*d_out]
        b_pack = jnp.tile(b2d, (1, group))                  # [1, G*d_out], f32
        seg_ones = jnp.kron(eye, jnp.ones((d_output, d_output), jnp.float32))
    else:
        w_pack = b_pack = seg_ones = None

    return GateParams(w_t=w_t.astype(compute_dtype), b2d=b2d, group=group,
                      w_pack=w_pack, b_pack=b_pack, seg_ones=seg_ones)


# ----------------------------------------------------------------------------- forward
def _launch_gate(kernel_fn, x2d, residents, out_cols, out_dtype, tr, x_buffers):
    n_rows, x_cols = x2d.shape
    grid = (pl.cdiv(n_rows, tr),)                           # partial last block, no pad
    resident_specs = [pl.BlockSpec(r.shape, lambda i: (0, 0)) for r in residents]

    def run(nbuf):
        x_spec, nbuf_used = _stream_spec((tr, x_cols), lambda i: (i, 0), nbuf)
        vmem = _vmem_limit_bytes(
            [(tr, x_cols, x2d.dtype, nbuf_used), (tr, out_cols, out_dtype, 2)]
            + [(r.shape[0], r.shape[1], r.dtype, 2) for r in residents])
        return pl.pallas_call(
            kernel_fn,
            out_shape=jax.ShapeDtypeStruct((n_rows, out_cols), out_dtype),
            grid=grid,
            in_specs=[x_spec] + resident_specs,
            out_specs=pl.BlockSpec((tr, out_cols), lambda i: (i, 0)),
            compiler_params=pltpu.CompilerParams(
                dimension_semantics=("parallel",),
                vmem_limit_bytes=vmem),
        )(x2d, *residents)

    if x_buffers > 2:
        try:
            return run(x_buffers)
        except Exception:  # fall back to default double buffering on older JAX
            return run(2)
    return run(2)


def gate_forward(gate_input, params: GateParams, *, row_tile=16384, out_dtype=None,
                 x_buffers=3):
    """Pallas Gate.forward: d_output * softmax((x @ W^T + b) / beta, axis=-1).

    gate_input: [..., d_input] (f32 or bf16); params from prepare_gate_params.
    row_tile counts original rows per grid step; out_dtype defaults to the input dtype.
    """
    d_input, d_output = params.w_t.shape
    if gate_input.shape[-1] != d_input:
        raise ValueError(f"expected last dim {d_input}, got {gate_input.shape}")
    x_dtype = jnp.dtype(gate_input.dtype)
    out_dtype = jnp.dtype(x_dtype if out_dtype is None else out_dtype)
    lead = gate_input.shape[:-1]
    n = 1
    for s in lead:
        n *= int(s)
    sublane = 16 if (x_dtype.itemsize < 4 or out_dtype.itemsize < 4) else 8

    g = params.group
    if g > 1 and params.w_pack is not None and n > 0 and n % g == 0:
        # Lane-dense packed path.
        x_cols, out_cols = g * d_input, g * d_output
        xp = gate_input.reshape(n // g, x_cols)             # pure layout plumbing
        cap = _rows_for_vmem(x_cols, x_dtype, out_cols, out_dtype)
        trp = _pick_row_tile(n // g, max(1, min(row_tile // g, cap)), sublane)
        w = params.w_pack if params.w_pack.dtype == x_dtype else params.w_pack.astype(x_dtype)
        kern = functools.partial(_gate_packed_kernel, d_output=float(d_output))
        out = _launch_gate(kern, xp, [w, params.b_pack, params.seg_ones],
                           out_cols, out_dtype, trp, x_buffers)
    else:
        # Row-wise fallback (d_output not a divisor of 128, or rows % group != 0).
        x2d = gate_input.reshape(n, d_input)
        cap = _rows_for_vmem(d_input, x_dtype, d_output, out_dtype)
        tr = _pick_row_tile(n, max(1, min(row_tile, cap)), sublane)
        w = params.w_t if params.w_t.dtype == x_dtype else params.w_t.astype(x_dtype)
        kern = functools.partial(_gate_rowwise_kernel, d_output=float(d_output))
        out = _launch_gate(kern, x2d, [w, params.b2d],
                           d_output, out_dtype, tr, x_buffers)

    return out.reshape(*lead, d_output)


def gate_reference(gate_input, weight, bias, *, beta=1.0):
    x = jnp.asarray(gate_input, jnp.float32)
    w = jnp.asarray(weight, jnp.float32)
    b = jnp.asarray(bias, jnp.float32)
    logits = (jnp.einsum("...i,oi->...o", x, w) + b) / float(beta)
    return w.shape[0] * jax.nn.softmax(logits, axis=-1)


# ----------------------------------------------------------------------------- demo
if __name__ == "__main__":
    batch, seq, d_input, d_output = 2, 8, 32, 16
    beta = 0.5

    key = jax.random.PRNGKey(0)
    kx, kw, kb, kx2 = jax.random.split(key, 4)
    x = jax.random.normal(kx, (batch, seq, d_input), dtype=jnp.float32)
    bound = 1.0 / (d_input ** 0.5)
    weight = jax.random.uniform(kw, (d_output, d_input), jnp.float32, -bound, bound)
    bias = jax.random.uniform(kb, (d_output,), jnp.float32, -bound, bound)

    ref = gate_reference(x, weight, bias, beta=beta)

    # 1) f32, lane-dense packed path (16 rows -> 2 packed rows, 128-lane output).
    #    Residual tolerance is dominated by the MXU's default-precision f32 matmul.
    p32 = prepare_gate_params(weight, bias, beta=beta, compute_dtype=jnp.float32)
    out32 = jax.block_until_ready(gate_forward(x, p32))
    assert out32.shape == (batch, seq, d_output)
    assert jnp.allclose(out32, ref, atol=2e-3, rtol=2e-2), "f32 packed mismatch"
    assert jnp.allclose(out32.sum(-1), float(d_output), atol=1e-2, rtol=1e-3)

    # 2) bf16 streaming (bf16 x / W / out, f32 matmul accumulation + f32 softmax).
    p16 = prepare_gate_params(weight, bias, beta=beta, compute_dtype=jnp.bfloat16)
    x16 = x.astype(jnp.bfloat16)
    out16 = jax.block_until_ready(gate_forward(x16, p16, out_dtype=jnp.bfloat16))
    assert out16.dtype == jnp.bfloat16
    assert jnp.allclose(out16.astype(jnp.float32), gate_reference(x16, weight, bias, beta=beta),
                        atol=3e-2, rtol=3e-2), "bf16 packed mismatch"

    # 3) Row count not divisible by the packing group -> row-wise fallback with a partial
    #    final block (no host-side pad / slice round-trip).
    x_odd = x[:, : seq - 1, :]                               # 14 rows
    out_odd = jax.block_until_ready(gate_forward(x_odd, p32))
    assert out_odd.shape == (batch, seq - 1, d_output)
    assert jnp.allclose(out_odd, ref[:, : seq - 1, :], atol=2e-3, rtol=2e-2), \
        "row-wise fallback mismatch"

    # 4) Multi-step grid on the packed path (exercises the deeper pipeline / megacore split).
    xl = jax.random.normal(kx2, (4, 512, d_input), dtype=jnp.float32)
    outl = jax.block_until_ready(gate_forward(xl, p32))
    refl = gate_reference(xl, weight, bias, beta=beta)
    assert jnp.allclose(outl, refl, atol=2e-3, rtol=2e-2), "multi-block packed mismatch"

    print("KERNEL_OK")
</pallas_src>

<mosaic_0001>
module attributes {stable_mosaic.version = 11 : i64} {
  func.func @_gate_packed_kernel(%arg0: i32, %arg1: memref<2x256xf32, #tpu.memory_space<vmem>>, %arg2: memref<256x128xf32, #tpu.memory_space<vmem>>, %arg3: memref<1x128xf32, #tpu.memory_space<vmem>>, %arg4: memref<128x128xf32, #tpu.memory_space<vmem>>, %arg5: memref<2x128xf32, #tpu.memory_space<vmem>>) attributes {dimension_semantics = [#tpu.dimension_semantics<parallel>], iteration_bounds = array<i64: 1>, scalar_prefetch = 0 : i64, scratch_operands = 0 : i64, tpu.core_type = #tpu.core_type<tc>, window_params = [{transform_indices = @transform_0, window_bounds = array<i64: 2, 256>}, {pipeline_mode = #tpu.pipeline_mode<synchronous>, transform_indices = @transform_1, window_bounds = array<i64: 256, 128>}, {pipeline_mode = #tpu.pipeline_mode<synchronous>, transform_indices = @transform_2, window_bounds = array<i64: 1, 128>}, {pipeline_mode = #tpu.pipeline_mode<synchronous>, transform_indices = @transform_3, window_bounds = array<i64: 128, 128>}, {transform_indices = @transform_4, window_bounds = array<i64: 2, 128>}]} {
    %c0 = arith.constant 0 : index
    %c0_0 = arith.constant 0 : index
    %0 = vector.load %arg1[%c0, %c0_0] : memref<2x256xf32, #tpu.memory_space<vmem>>, vector<2x256xf32>
    %c0_1 = arith.constant 0 : index
    %c0_2 = arith.constant 0 : index
    %1 = vector.load %arg2[%c0_1, %c0_2] : memref<256x128xf32, #tpu.memory_space<vmem>>, vector<256x128xf32>
    %cst = arith.constant dense<0.000000e+00> : vector<2x128xf32>
    %2 = tpu.matmul %0, %1, %cst {dimension_numbers = #tpu.dot_dimension_numbers<[1], [0], [0], [1], [0, 0, 1, 1], [], []>} : vector<2x256xf32>, vector<256x128xf32>, vector<2x128xf32> -> vector<2x128xf32>
    %c0_3 = arith.constant 0 : index
    %c0_4 = arith.constant 0 : index
    %3 = vector.load %arg3[%c0_3, %c0_4] : memref<1x128xf32, #tpu.memory_space<vmem>>, vector<1x128xf32>
    %4 = vector.broadcast %3 : vector<1x128xf32> to vector<2x128xf32>
    %5 = arith.addf %2, %4 : vector<2x128xf32>
    %cst_5 = arith.constant dense<0xFF800000> : vector<2xf32>
    %6 = vector.multi_reduction <maximumf>, %5, %cst_5 [1] : vector<2x128xf32> to vector<2xf32>
    %7 = vector.shape_cast %6 : vector<2xf32> to vector<2x1xf32>
    %8 = vector.broadcast %7 : vector<2x1xf32> to vector<2x128xf32>
    %9 = arith.subf %5, %8 : vector<2x128xf32>
    %10 = math.exp %9 : vector<2x128xf32>
    %c0_6 = arith.constant 0 : index
    %c0_7 = arith.constant 0 : index
    %11 = vector.load %arg4[%c0_6, %c0_7] : memref<128x128xf32, #tpu.memory_space<vmem>>, vector<128x128xf32>
    %cst_8 = arith.constant dense<0.000000e+00> : vector<2x128xf32>
    %12 = tpu.matmul %10, %11, %cst_8 {dimension_numbers = #tpu.dot_dimension_numbers<[1], [0], [0], [1], [0, 0, 1, 1], [], []>} : vector<2x128xf32>, vector<128x128xf32>, vector<2x128xf32> -> vector<2x128xf32>
    %13 = tpu.reciprocal %12 : vector<2x128xf32> -> vector<2x128xf32>
    %cst_9 = arith.constant 1.600000e+01 : f32
    %14 = vector.broadcast %cst_9 : f32 to vector<2x128xf32>
    %15 = arith.mulf %14, %13 : vector<2x128xf32>
    %16 = arith.mulf %10, %15 : vector<2x128xf32>
    %c0_10 = arith.constant 0 : index
    %c0_11 = arith.constant 0 : index
    %17 = vector.load %arg5[%c0_10, %c0_11] : memref<2x128xf32, #tpu.memory_space<vmem>>, vector<2x128xf32>
    tpu.vector_store %arg5[%c0_10, %c0_11], %16 {strides = array<i32>} : memref<2x128xf32, #tpu.memory_space<vmem>>, vector<2x128xf32>,
    return
  }
  func.func @transform_0(%arg0: i32) -> (i32, i32) {
    %c0_i32 = arith.constant 0 : i32
    %c0_i32_0 = arith.constant 0 : i32
    return %arg0, %c0_i32 : i32, i32
  }
  func.func @transform_1(%arg0: i32) -> (i32, i32) {
    %c0_i32 = arith.constant 0 : i32
    %c0_i32_0 = arith.constant 0 : i32
    %c0_i32_1 = arith.constant 0 : i32
    return %c0_i32, %c0_i32_0 : i32, i32
  }
  func.func @transform_2(%arg0: i32) -> (i32, i32) {
    %c0_i32 = arith.constant 0 : i32
    %c0_i32_0 = arith.constant 0 : i32
    %c0_i32_1 = arith.constant 0 : i32
    return %c0_i32, %c0_i32_0 : i32, i32
  }
  func.func @transform_3(%arg0: i32) -> (i32, i32) {
    %c0_i32 = arith.constant 0 : i32
    %c0_i32_0 = arith.constant 0 : i32
    %c0_i32_1 = arith.constant 0 : i32
    return %c0_i32, %c0_i32_0 : i32, i32
  }
  func.func @transform_4(%arg0: i32) -> (i32, i32) {
    %c0_i32 = arith.constant 0 : i32
    %c0_i32_0 = arith.constant 0 : i32
    return %arg0, %c0_i32 : i32, i32
  }
}

</mosaic_0001>

<bundles_post_ra>
// kernel: tpu_custom_call.1
= control target key start
LH: loop header
LB: loop body
LE: loop exit
PB: predicated region body
PF: predicated region fallthrough
CT: control target
= control target key end

     0   :  { %9 = vsyncpa [#allocation3], 0  ;;  %s526_s0 = inlined_call_operand.hbm [shape: f32[2,256], index: 0, kind: input, shape index: {}]   ;;  %s527_s1 = inlined_call_operand.hbm [shape: f32[256,128], index: 1, kind: input, shape index: {}]   ;;  %s528_s2 = inlined_call_operand.vmem [shape: f32[1,128], index: 2, kind: input, shape index: {}]   ;;  %s529_s3 = inlined_call_operand.hbm [shape: f32[128,128], index: 3, kind: input, shape index: {}]   ;;  %s530_s4 = inlined_call_operand.hbm [shape: f32[2,128], index: 4, kind: output, shape index: {}]  }
   0x1   :  { %10 = vsyncpa [#allocation6], 0 }
   0x2   :  { %11 = vsyncpa [#allocation4], 0  ;;  %s478_s15 = smov [#allocation5]  }
   0x3   :  { %s27_s16 = sshll.u32 %s478_s15, 4  ;;  %s28_s16 = int_to_ptr.vmem [resolvable:$true] %s27_s16 }
   0x4   :  { %s400_s17 = scalar_lea.vmem %s28_s16, 4096  ;;  %p405_p1 = scmp.lt.s32.totalorder %s28_s16, %s28_s16 }
   0x5   :  { %p401_p0 = scmp.ne.s32.totalorder %s28_s16, %s400_s17  ;;  %p406_p2 = scmp.lt.s32.totalorder %s400_s17, %s400_s17 }
   0x7   :  { %p407_p3 = por %p406_p2, %p405_p1 }
   0x9   :  { %p408_p4 = pnand %p407_p3, %p401_p0 }
   0xb   :  { %411 = shalt.err (!%p408_p4)
}
   0xc   :  { %s479_s18 = smov 128   ;;  %s480_s19 = smov 8  }
   0xd   :  { %33 = dma.hbm_to_vmem [thread:$0]  %s527_s1, 4096, %s28_s16, [#allocation6], %s479_s18, %s479_s18, %s480_s19  }
   0xe   :  { %s481_s22 = smov [#allocation2]   ;;  %s482_s24 = smov [#allocation7]  }
   0xf   :  { %s18_s23 = sshll.u32 %s481_s22, 4  ;;  %s41_s25 = sshll.u32 %s482_s24, 4  ;;  %s19_s23 = int_to_ptr.vmem [resolvable:$true] %s18_s23  ;;  %s42_s25 = int_to_ptr.vmem [resolvable:$true] %s41_s25 }
  0x10   :  { %s420_s26 = scalar_lea.vmem %s19_s23, 64  ;;  %p425_p6 = scmp.lt.s32.totalorder %s19_s23, %s19_s23 }
  0x11   :  { %p421_p5 = scmp.ne.s32.totalorder %s19_s23, %s420_s26  ;;  %p426_p7 = scmp.lt.s32.totalorder %s420_s26, %s420_s26 }
  0x13   :  { %p427_p8 = por %p426_p7, %p425_p6 }
  0x15   :  { %p428_p9 = pnand %p427_p8, %p421_p5 }
  0x17   :  { %431 = shalt.err (!%p428_p9)
}
  0x18   :  { %21 = dma.hbm_to_vmem [thread:$0]  %s526_s0, 64, %s19_s23, [#allocation3]  }
  0x19   :  { %s440_s29 = scalar_lea.vmem %s42_s25, 2048  ;;  %p445_p11 = scmp.lt.s32.totalorder %s42_s25, %s42_s25 }
  0x1a   :  { %p441_p10 = scmp.ne.s32.totalorder %s42_s25, %s440_s29  ;;  %p446_p12 = scmp.lt.s32.totalorder %s440_s29, %s440_s29 }
  0x1c   :  { %p447_p13 = por %p446_p12, %p445_p11 }
  0x1e   :  { %p448_p0 = pnand %p447_p13, %p441_p10 }
  0x20   :  { %451 = shalt.err (!%p448_p0)
}
  0x21   :  { %47 = dma.hbm_to_vmem [thread:$0]  %s529_s3, 2048, %s42_s25, [#allocation6], %s479_s18, %s479_s18, %s480_s19  }
  0x22   :  { %472 = dma.done.wait [#allocation3], 64  }
  0x23   :  { %473 = vsyncadd [#allocation3], 4294967232 }
  0x24   :  { %474 = dma.done.wait [#allocation6], 6144  }
  0x25   :  { %475 = vsyncadd [#allocation6], 4294961152  ;;  %v89_v0 = vld [vmem:[#allocation5 + $0xf8] sm:$0xff]  ;;  %v88_v2 = vld [vmem:[#allocation5 + $0xf0] sm:$0xff]  ;;  %v483_v35 = vmov 0.0   ;;  %vm178_vm0 = vcmask 1041408  }
  0x26   :  { %v73_v1 = vld [vmem:[#allocation5 + $0x78] sm:$0xff]  ;;  %293 = vmatprep.subr.mxu0 %v89_v0  ;;  %v72_v3 = vld [vmem:[#allocation5 + $0x70] sm:$0xff]  ;;  %v87_v4 = vld [vmem:[#allocation5 + $0xe8] sm:$0xff]  ;;  %345 = vmatprep.subr.mxu1 %v483_v35  ;;  %vm484_vm1 = vmmov 0  }
  0x27   :  { %294 = vmatpush3.msra.mxu0 %v73_v1  ;;  %v71_v5 = vld [vmem:[#allocation5 + $0x68] sm:$0xff]  ;;  %v86_v6 = vld [vmem:[#allocation5 + $0xe0] sm:$0xff]  ;;  %v85_v8 = vld [vmem:[#allocation5 + $0xd8] sm:$0xff]  ;;  %377 = vmatprep.mubr.msk.f32.mxu1 %vm484_vm1, %v483_v35 }
  0x28   :  { %295 = vmatprep.subr.mxu0 %v88_v2  ;;  %v70_v7 = vld [vmem:[#allocation5 + $0x60] sm:$0xff]  ;;  %v69_v9 = vld [vmem:[#allocation5 + $0x58] sm:$0xff]  ;;  %v84_v10 = vld [vmem:[#allocation5 + $0xd0] sm:$0xff] }
  0x29   :  { %296 = vmatpush3.msra.mxu0 %v72_v3  ;;  %v68_v11 = vld [vmem:[#allocation5 + $0x50] sm:$0xff]  ;;  %v83_v12 = vld [vmem:[#allocation5 + $0xc8] sm:$0xff]  ;;  %v292_v13 = vld.sshfl [vmem:[#allocation2] sm:$0x33 pattern:$0x76325410] }
  0x2a   :  { %297 = vmatprep.subr.mxu0 %v87_v4  ;;  %v67_v14 = vld [vmem:[#allocation5 + $0x48] sm:$0xff]  ;;  %v105_v15 = vcombine.high %v292_v13, %v292_v13  ;;  %v82_v16 = vld [vmem:[#allocation5 + $0xc0] sm:$0xff]  ;;  %v81_v18 = vld [vmem:[#allocation5 + $0xb8] sm:$0xff] }
  0x2b   :  { %298 = vmatpush3.msra.mxu0 %v71_v5  ;;  %v66_v17 = vld [vmem:[#allocation5 + $0x40] sm:$0xff]  ;;  %v65_v19 = vld [vmem:[#allocation5 + $0x38] sm:$0xff]  ;;  %v80_v20 = vld [vmem:[#allocation5 + $0xb0] sm:$0xff] }
  0x2c   :  { %299 = vmatprep.subr.mxu0 %v86_v6  ;;  %172 = vmatprep.mubr.f32.mxu0 %v105_v15  ;;  %v64_v21 = vld [vmem:[#allocation5 + $0x30] sm:$0xff]  ;;  %v79_v22 = vld [vmem:[#allocation5 + $0xa8] sm:$0xff]  ;;  %v78_v24 = vld [vmem:[#allocation5 + $0xa0] sm:$0xff] }
  0x2d   :  { %300 = vmatpush3.msra.mxu0 %v70_v7  ;;  %v63_v23 = vld [vmem:[#allocation5 + $0x28] sm:$0xff]  ;;  %v62_v25 = vld [vmem:[#allocation5 + $0x20] sm:$0xff]  ;;  %v77_v26 = vld [vmem:[#allocation5 + $0x98] sm:$0xff] }
  0x2e   :  { %301 = vmatprep.subr.mxu0 %v85_v8  ;;  %v61_v27 = vld [vmem:[#allocation5 + $0x18] sm:$0xff]  ;;  %v76_v28 = vld [vmem:[#allocation5 + $0x90] sm:$0xff]  ;;  %v75_v30 = vld [vmem:[#allocation5 + $0x88] sm:$0xff] }
  0x2f   :  { %302 = vmatpush3.msra.mxu0 %v69_v9  ;;  %v60_v29 = vld [vmem:[#allocation5 + $0x10] sm:$0xff]  ;;  %v59_v31 = vld [vmem:[#allocation5 + $0x8] sm:$0xff]  ;;  %v74_v32 = vld [vmem:[#allocation5 + $0x80] sm:$0xff] }
  0x30   :  { %303 = vmatprep.subr.mxu0 %v84_v10  ;;  %v58_v33 = vld [vmem:[#allocation5] sm:$0xff]  ;;  %v200_v34 = vld [vmem:[#allocation7 + $0x78] sm:$0xff]  ;;  %v199_v36 = vld [vmem:[#allocation7 + $0x70] sm:$0xff] }
  0x31   :  { %304 = vmatpush3.msra.mxu0 %v68_v11  ;;  %346 = vmatpush3.msra.mxu1 %v200_v34  ;;  %v198_v37 = vld [vmem:[#allocation7 + $0x68] sm:$0xff]  ;;  %v197_v38 = vld [vmem:[#allocation7 + $0x60] sm:$0xff]  ;;  %v196_v39 = vld [vmem:[#allocation7 + $0x58] sm:$0xff] }
  0x32   :  { %305 = vmatprep.subr.mxu0 %v83_v12  ;;  %347 = vmatprep.subr.mxu1 %v483_v35  ;;  %v195_v40 = vld [vmem:[#allocation7 + $0x50] sm:$0xff]  ;;  %v291_v43 = vld [vmem:[%s528_s2] ss:$0 sm:$0xff]  ;;  %v194_v47 = vld [vmem:[#allocation7 + $0x48] sm:$0xff]  ;;  %s485_s2 = smov [#allocation8]  }
  0x33   :  { %306 = vmatpush3.msra.mxu0 %v67_v14  ;;  %348 = vmatpush3.msra.mxu1 %v199_v36  ;;  %v193_v48 = vld [vmem:[#allocation7 + $0x40] sm:$0xff]  ;;  %v192_v49 = vld [vmem:[#allocation7 + $0x38] sm:$0xff]  ;;  %v191_v50 = vld [vmem:[#allocation7 + $0x30] sm:$0xff]  ;;  %s281_s5 = sshll.u32 %s485_s2, 4  ;;  %s282_s5 = int_to_ptr.vmem [resolvable:$true] %s281_s5 }
  0x34   :  { %307 = vmatprep.subr.mxu0 %v82_v16  ;;  %349 = vmatprep.subr.mxu1 %v483_v35  ;;  %v190_v51 = vld [vmem:[#allocation7 + $0x28] sm:$0xff]  ;;  %v189_v52 = vld [vmem:[#allocation7 + $0x20] sm:$0xff]  ;;  %v188_v53 = vld [vmem:[#allocation7 + $0x18] sm:$0xff]  ;;  %s452_s6 = scalar_lea.vmem %s282_s5, 32  ;;  %p457_p2 = scmp.lt.s32.totalorder %s282_s5, %s282_s5 }
  0x35   :  { %308 = vmatpush3.msra.mxu0 %v66_v17  ;;  %350 = vmatpush3.msra.mxu1 %v198_v37  ;;  %v187_v54 = vld [vmem:[#allocation7 + $0x10] sm:$0xff]  ;;  %v186_v55 = vld [vmem:[#allocation7 + $0x8] sm:$0xff]  ;;  %v185_v56 = vld [vmem:[#allocation7] sm:$0xff]  ;;  %p453_p1 = scmp.ne.s32.totalorder %s282_s5, %s452_s6  ;;  %p458_p3 = scmp.lt.s32.totalorder %s452_s6, %s452_s6 }
  0x36   :  { %309 = vmatprep.subr.mxu0 %v81_v18  ;;  %351 = vmatprep.subr.mxu1 %v483_v35 }
  0x37   :  { %310 = vmatpush3.msra.mxu0 %v65_v19  ;;  %352 = vmatpush3.msra.mxu1 %v197_v38  ;;  %p459_p4 = por %p458_p3, %p457_p2 }
  0x38   :  { %311 = vmatprep.subr.mxu0 %v80_v20  ;;  %353 = vmatprep.subr.mxu1 %v483_v35 }
  0x39   :  { %312 = vmatpush3.msra.mxu0 %v64_v21  ;;  %354 = vmatpush3.msra.mxu1 %v196_v39  ;;  %p460_p5 = pnand %p459_p4, %p453_p1 }
  0x3a   :  { %313 = vmatprep.subr.mxu0 %v79_v22  ;;  %355 = vmatprep.subr.mxu1 %v483_v35 }
  0x3b   :  { %314 = vmatpush3.msra.mxu0 %v63_v23  ;;  %356 = vmatpush3.msra.mxu1 %v195_v40 }
  0x3c   :  { %315 = vmatprep.subr.mxu0 %v78_v24  ;;  %357 = vmatprep.subr.mxu1 %v483_v35 }
  0x3d   :  { %316 = vmatpush3.msra.mxu0 %v62_v25  ;;  %358 = vmatpush3.msra.mxu1 %v194_v47 }
  0x3e   :  { %317 = vmatprep.subr.mxu0 %v77_v26  ;;  %359 = vmatprep.subr.mxu1 %v483_v35 }
  0x3f   :  { %318 = vmatpush3.msra.mxu0 %v61_v27  ;;  %360 = vmatpush3.msra.mxu1 %v193_v48 }
  0x40   :  { %319 = vmatprep.subr.mxu0 %v76_v28  ;;  %361 = vmatprep.subr.mxu1 %v483_v35 }
  0x41   :  { %320 = vmatpush3.msra.mxu0 %v60_v29  ;;  %362 = vmatpush3.msra.mxu1 %v192_v49 }
  0x42   :  { %321 = vmatprep.subr.mxu0 %v75_v30  ;;  %363 = vmatprep.subr.mxu1 %v483_v35 }
  0x43   :  { %322 = vmatpush3.msra.mxu0 %v59_v31  ;;  %364 = vmatpush3.msra.mxu1 %v191_v50 }
  0x44   :  { %323 = vmatprep.subr.mxu0 %v74_v32  ;;  %365 = vmatprep.subr.mxu1 %v483_v35 }
  0x45   :  { %324 = vmatpush3.msra.mxu0 %v58_v33  ;;  %366 = vmatpush3.msra.mxu1 %v190_v51 }
  0x46   :  { %173 = vmatmul.mubr.f32.vlgmr.msra.gmra.mxu0 %v292_v13  ;;  %367 = vmatprep.subr.mxu1 %v483_v35 }
  0x47   :  { %368 = vmatpush3.msra.mxu1 %v189_v52 }
  0x48   :  { %369 = vmatprep.subr.mxu1 %v483_v35 }
  0x49   :  { %370 = vmatpush3.msra.mxu1 %v188_v53 }
  0x4a   :  { %371 = vmatprep.subr.mxu1 %v483_v35 }
  0x4b   :  { %372 = vmatpush3.msra.mxu1 %v187_v54 }
  0x4c   :  { %373 = vmatprep.subr.mxu1 %v483_v35 }
  0x4d   :  { %374 = vmatpush3.msra.mxu1 %v186_v55 }
  0x4e   :  { %375 = vmatprep.subr.mxu1 %v483_v35 }
  0x4f   :  { %376 = vmatpush3.msra.mxu1 %v185_v56 }
 0x106   :  { %v325_v41 = vpop.f32.mrf.mxu0 }
 0x108   :  { %v326_v42 = vpop.f32.mrf.mxu0 }
 0x109   :  { %v327_v44 = vadd.f32 %v326_v42, %v325_v41 }
 0x10b   :  { %v175_v45 = vadd.f32 %v327_v44, %v291_v43 }
 0x10d   :  { %v179_v46 = vsel %vm178_vm0, %v175_v45, -inf }
 0x10e   :  { %180 = vmax.xlane.f32.xlu0 %v179_v46 }
 0x197   :  { %v181_v57 = vpop.xlane.xlu0 %180 }
 0x198   :  { %v182_v58 = vsub.f32 %v175_v45, %v181_v57 }
 0x19a   :  { %v183_v59 = vmul.f32 1.442695, %v182_v58 }
 0x19c   :  { %388 = vpow2.f32 %v183_v59 }
 0x1a9   :  { %v389_v60 = vpop.eup %388 }
 0x1aa   :  { %378 = vmatmul.mubr.f32.vlgmr.msra.gmra.mxu1 %v389_v60 }
 0x26a   :  { %v267_v61 = vpop.f32.mrf.mxu1 }
 0x26b   :  { %390 = vrcp.f32 %v267_v61 }
 0x26c   :  { %v379_v62 = vpop.f32.mrf.mxu1 }
 0x278   :  { %v391_v63 = vpop.eup %390 }
 0x279   :  { %v272_v0 = vmul.f32 16.0, %v391_v63 }
 0x27b   :  { %v273_v1 = vmul.f32 %v389_v60, %v272_v0 }
 0x27d   :  { %274 = vst [vmem:[#allocation8] sm:$0x3] %v273_v1 }
 0x27e   :  { %463 = shalt.err (!%p460_p5)
}
 0x27f   :  { %284 = dma.vmem_to_hbm [thread:$0]  %s282_s5, 32, %s530_s4, [#allocation4]  }
 0x280   :  { %476 = dma.done.wait [#allocation4], 32  }
 0x281   :  { %477 = vsyncadd [#allocation4], 4294967264 }
 0x282   :  { %288 = vsyncpa [#allocation3], 1 }
 0x283   :  { %289 = vsyncpa [#allocation6], 1 }
 0x284   :  { %290 = vsyncpa [#allocation4], 1 }

</bundles_post_ra>
